<compile_context>
chip_gen: v5e
topology: v5e:2x2
jax: 0.10.0
libtpu: 0.0.40
codegen_flags: <defaults>
</compile_context>

<pallas_src>
import functools

import jax
import jax.numpy as jnp
from jax.experimental import pallas as pl
from jax.experimental.pallas import tpu as pltpu


# Two parallel grid blocks feed both v7x TensorCores; on single-TC v5e/v6e, 1 avoids the
# (tiny) per-step pipeline overhead.  2 is the better universal default.
_NUM_PARALLEL_BLOCKS = 2


def _is_pow2(n):
    return n > 0 and (n & (n - 1)) == 0


# ----------------------------------------------------------------------------- erf / GELU
def _erf_f32(x):
    """f32 rational erf approximation (matches XLA's ErfImpl32 to ~1 ulp).

    Implemented with mul/add/div only so it lowers cleanly in Mosaic.
    """
    x = jnp.clip(x, -4.0, 4.0)
    x2 = x * x
    p = jnp.float32(-2.72614225801306e-10)
    p = p * x2 + jnp.float32(2.77068142495902e-08)
    p = p * x2 + jnp.float32(-2.10102402082508e-06)
    p = p * x2 + jnp.float32(-5.69250639462346e-05)
    p = p * x2 + jnp.float32(-7.34990630326855e-04)
    p = p * x2 + jnp.float32(-2.95459980854025e-03)
    p = p * x2 + jnp.float32(-1.60960333262415e-02)
    q = jnp.float32(-1.45660718464996e-05)
    q = q * x2 + jnp.float32(-2.13374055278905e-04)
    q = q * x2 + jnp.float32(-1.68282697438203e-03)
    q = q * x2 + jnp.float32(-7.37332916720468e-03)
    q = q * x2 + jnp.float32(-1.42647390514189e-02)
    return (x * p) / q


def _gelu_exact(x):
    # nn.GELU() default (approximate='none'): 0.5 * x * (1 + erf(x / sqrt(2)))
    inv_sqrt2 = jnp.float32(0.7071067811865476)
    return jnp.float32(0.5) * x * (jnp.float32(1.0) + _erf_f32(x * inv_sqrt2))


# ----------------------------------------------------------------------------- roll probe
def _probe_roll_convention():
    """True iff pltpu.roll follows the jnp.roll convention: result[i] = x[(i - shift) % N]."""
    def k(x_ref, o_ref):
        o_ref[...] = pltpu.roll(x_ref[...], shift=1, axis=1)

    x = jnp.tile(jax.lax.iota(jnp.float32, 128)[None, :], (8, 1))
    y = pl.pallas_call(k, out_shape=jax.ShapeDtypeStruct((8, 128), jnp.float32))(x)
    return bool(jax.device_get(y[0, 0]) == 127.0)


# Run the probe ONCE at import, outside any jit (review item: no hidden compile / no
# ConcretizationTypeError if clg_forward is first traced under jax.jit).
try:
    _ROLL_IS_JNP = _probe_roll_convention()
except Exception:  # conservative fallback: assume jnp.roll convention
    _ROLL_IS_JNP = True


# ----------------------------------------------------------------------------- kernel
def _clg_kernel(x_ref, w_ref, gb_ref, o_ref, taps_ref, *,
                eps, H, W, Cin, Cout, roll_is_jnp):
    # x_ref:    (1, Cin, L)        one block; L = images_per_block * H*W on the lane axis
    # w_ref:    (Cout+1, 9*Cin+1)  packed [conv taps | bias column]; last row = column means
    # gb_ref:   (Cout, 2)          packed [ln gamma | ln beta]
    # o_ref:    (1, Cout, L)       output slab (natively NCHW after a free reshape)
    # taps_ref: (9*Cin+1, L) VMEM  stacked rolled+masked taps; last row = ones (bias/mean)
    L = x_ref.shape[2]
    HW = H * W
    x = x_ref[0]                                            # (Cin, L) f32

    # ---- in-kernel border masks from a lane iota (no mask operand, no HBM traffic) ----
    lane = jax.lax.broadcasted_iota(jnp.int32, (1, L), 1)   # flat pixel index in the block
    if _is_pow2(HW) and _is_pow2(W):
        q = lane & (HW - 1)                                 # index within one image
        hh = q >> (W.bit_length() - 1)                      # row
        ww = q & (W - 1)                                    # col
    else:
        # TODO(synk): non-power-of-two W / H*W relies on int vector div/rem lowering; if a
        # target Mosaic version rejects it, fall back to a tiny (2, L) int32 coord operand.
        q = lane % HW
        hh = q // W
        ww = q % W
    one = jnp.ones((1, L), jnp.float32)
    zero = jnp.zeros((1, L), jnp.float32)
    m_top = jnp.where(hh >= 1, one, zero)                   # valid for ody = -1
    m_bot = jnp.where(hh <= H - 2, one, zero)               # valid for ody = +1
    m_lft = jnp.where(ww >= 1, one, zero)                   # valid for odx = -1
    m_rgt = jnp.where(ww <= W - 2, one, zero)               # valid for odx = +1

    # ---- Conv2d(3x3, padding=1): stack the 9 taps (fused im2col) into VMEM scratch ----
    tap = 0
    for ody in (-1, 0, 1):
        for odx in (-1, 0, 1):
            d = ody * W + odx                               # flat displacement along lanes
            if d == 0:
                xt = x                                      # center tap: no shift, no mask
            else:
                s = (-d) % L if roll_is_jnp else d % L
                xs = pltpu.roll(x, shift=s, axis=1)         # xs[:, p] = x[:, p + d]  (XLU)
                mv = m_top if ody == -1 else (m_bot if ody == 1 else None)
                mh = m_lft if odx == -1 else (m_rgt if odx == 1 else None)
                if mv is None:
                    mf = mh
                elif mh is None:
                    mf = mv
                else:
                    mf = mv * mh
                xt = xs * mf                                # zero padded / cross-image reads
            taps_ref[pl.ds(tap * Cin, Cin), :] = xt
            tap += 1
    taps_ref[pl.ds(9 * Cin, 1), :] = one                    # ones row -> bias & bias-mean

    # ---- single MXU matmul: rows 0..Cout-1 = conv + bias, row Cout = channel mean mu ----
    yf = jnp.dot(w_ref[...], taps_ref[...],
                 preferred_element_type=jnp.float32)        # (Cout+1, L)
    y = yf[:Cout]                                           # (Cout, L)
    mu = yf[Cout:Cout + 1]                                  # (1, L)   free from the matmul

    # ---- channels-first LayerNorm (only E[y^2] needs a cross-sublane reduce) ----
    ms = jnp.sum(y * y, axis=0, keepdims=True) * jnp.float32(1.0 / Cout)
    var = jnp.maximum(ms - mu * mu, jnp.float32(0.0))       # guard cancellation (biased var)
    rstd = jax.lax.rsqrt(var + jnp.float32(eps))            # EUP slot
    gamma = gb_ref[:, 0:1]                                  # (Cout, 1)
    beta = gb_ref[:, 1:2]                                   # (Cout, 1)
    z = (y - mu) * rstd * gamma + beta                      # (Cout, L)

    # ---- exact GELU, lane-dense store ----
    o_ref[0] = _gelu_exact(z).astype(o_ref.dtype)


# ----------------------------------------------------------------------------- wrapper
def clg_forward(x_nchw, conv_w, conv_b, ln_gamma, ln_beta, *, eps=1e-6):
    """CLG forward.  x_nchw: (B, Cin, H, W); conv_w: (Cout, Cin, 3, 3).  Returns NCHW."""
    B, Cin, H, W = x_nchw.shape
    Cout = conv_w.shape[0]
    HW = H * W

    G = _NUM_PARALLEL_BLOCKS if (B % _NUM_PARALLEL_BLOCKS == 0) else 1
    Bg = B // G                # images folded into each block's lane axis
    L = Bg * HW                # lane width per grid block

    # --- layout glue only (cheap reshapes / tiny transposes, no data inflation) ---
    x_blk = (x_nchw.astype(jnp.float32)
             .reshape(G, Bg, Cin, HW)
             .transpose(0, 2, 1, 3)
             .reshape(G, Cin, L))                                        # (G, Cin, L)

    # packed weight: (Cout, Cin, 3, 3) -> (Cout, 9*Cin) with column t*Cin+ci, t = ky*3+kx
    w_flat = (conv_w.astype(jnp.float32)
              .transpose(0, 2, 3, 1)
              .reshape(Cout, 9 * Cin))
    w_full = jnp.concatenate(
        [w_flat, conv_b.astype(jnp.float32)[:, None]], axis=1)          # (Cout, 9Cin+1)
    w_pack = jnp.concatenate(
        [w_full, jnp.mean(w_full, axis=0, keepdims=True)], axis=0)      # (Cout+1, 9Cin+1)

    gb = jnp.stack([ln_gamma, ln_beta], axis=1).astype(jnp.float32)     # (Cout, 2)

    kern = functools.partial(_clg_kernel, eps=float(eps), H=H, W=W, Cin=Cin,
                             Cout=Cout, roll_is_jnp=_ROLL_IS_JNP)

    # TODO(synk): at production H*W add a lane-tiling grid axis and set
    # pltpu.CompilerParams(vmem_limit_bytes=...) per generation (v7x: 64 MiB physical /
    # 32 MiB scoped default; v5e: raise the 16 MiB scoped default); per-step footprint is
    # roughly 2*(Cin+Cout)*Ltile*4 B (double-buffered in/out) + (9*Cin+1)*Ltile*4 B scratch.
    out = pl.pallas_call(
        kern,
        out_shape=jax.ShapeDtypeStruct((G, Cout, L), jnp.float32),
        grid=(G,),
        in_specs=[
            pl.BlockSpec((1, Cin, L), lambda g: (g, 0, 0)),
            pl.BlockSpec((Cout + 1, 9 * Cin + 1), lambda g: (0, 0)),
            pl.BlockSpec((Cout, 2), lambda g: (0, 0)),
        ],
        out_specs=pl.BlockSpec((1, Cout, L), lambda g: (g, 0, 0)),
        scratch_shapes=[pltpu.VMEM((9 * Cin + 1, L), jnp.float32)],
        compiler_params=pltpu.CompilerParams(dimension_semantics=("parallel",)),
    )(x_blk, w_pack, gb)

    return (out.reshape(G, Cout, Bg, HW)
               .transpose(0, 2, 1, 3)
               .reshape(B, Cout, H, W))                                  # natively NCHW


# ----------------------------------------------------------------------------- reference
def clg_reference(x_nchw, conv_w, conv_b, ln_gamma, ln_beta, *, eps=1e-6):
    out = jax.lax.conv_general_dilated(
        x_nchw.astype(jnp.float32), conv_w.astype(jnp.float32),
        window_strides=(1, 1), padding="SAME",
        dimension_numbers=("NCHW", "OIHW", "NCHW"))
    out = out + conv_b[None, :, None, None]
    u = out.mean(axis=1, keepdims=True)
    s = ((out - u) ** 2).mean(axis=1, keepdims=True)
    xh = (out - u) / jnp.sqrt(s + eps)
    y = ln_gamma[None, :, None, None] * xh + ln_beta[None, :, None, None]
    return 0.5 * y * (1.0 + jax.lax.erf(y / jnp.sqrt(2.0)))


# ----------------------------------------------------------------------------- main
if __name__ == "__main__":
    B, Cin, Cout, H, W = 2, 4, 8, 16, 16

    key = jax.random.PRNGKey(0)
    kx, kw, kb, kg, kbe = jax.random.split(key, 5)

    x = jax.random.normal(kx, (B, Cin, H, W), dtype=jnp.float32)
    conv_w = 0.1 * jax.random.normal(kw, (Cout, Cin, 3, 3), dtype=jnp.float32)
    conv_b = 0.1 * jax.random.normal(kb, (Cout,), dtype=jnp.float32)
    ln_gamma = 1.0 + 0.1 * jax.random.normal(kg, (Cout,), dtype=jnp.float32)
    ln_beta = 0.1 * jax.random.normal(kbe, (Cout,), dtype=jnp.float32)

    out = jax.block_until_ready(clg_forward(x, conv_w, conv_b, ln_gamma, ln_beta))
    ref = jax.block_until_ready(clg_reference(x, conv_w, conv_b, ln_gamma, ln_beta))

    assert out.shape == (B, Cout, H, W), out.shape
    max_err = float(jnp.max(jnp.abs(out - ref)))
    assert jnp.allclose(out, ref, atol=2e-5, rtol=2e-5), max_err

    print("KERNEL_OK")
</pallas_src>

<mosaic_0001>
module attributes {stable_mosaic.version = 11 : i64} {
  func.func @k(%arg0: memref<8x128xf32, #tpu.memory_space<vmem>>, %arg1: memref<8x128xf32, #tpu.memory_space<vmem>>) attributes {dimension_semantics = [], scalar_prefetch = 0 : i64, scratch_operands = 0 : i64, tpu.core_type = #tpu.core_type<tc>} {
    %c0 = arith.constant 0 : index
    %c0_0 = arith.constant 0 : index
    %0 = vector.load %arg0[%c0, %c0_0] : memref<8x128xf32, #tpu.memory_space<vmem>>, vector<8x128xf32>
    %c1_i32 = arith.constant 1 : i32
    %1 = tpu.dynamic_rotate %0 by %c1_i32 dim 1 : vector<8x128xf32>, i32 -> vector<8x128xf32>
    %c0_1 = arith.constant 0 : index
    %c0_2 = arith.constant 0 : index
    %2 = vector.load %arg1[%c0_1, %c0_2] : memref<8x128xf32, #tpu.memory_space<vmem>>, vector<8x128xf32>
    tpu.vector_store %arg1[%c0_1, %c0_2], %1 {strides = array<i32>} : memref<8x128xf32, #tpu.memory_space<vmem>>, vector<8x128xf32>,
    return
  }
}

module attributes {stable_mosaic.version = 11 : i64} {
  func.func @_clg_kernel(%arg0: i32, %arg1: memref<1x4x256xf32, #tpu.memory_space<vmem>>, %arg2: memref<9x37xf32, #tpu.memory_space<vmem>>, %arg3: memref<8x2xf32, #tpu.memory_space<vmem>>, %arg4: memref<1x8x256xf32, #tpu.memory_space<vmem>>, %arg5: memref<37x256xf32, #tpu.memory_space<vmem>>) attributes {dimension_semantics = [#tpu.dimension_semantics<parallel>], iteration_bounds = array<i64: 2>, scalar_prefetch = 0 : i64, scratch_operands = 1 : i64, tpu.core_type = #tpu.core_type<tc>, window_params = [{transform_indices = @transform_0, window_bounds = array<i64: 1, 4, 256>}, {pipeline_mode = #tpu.pipeline_mode<synchronous>, transform_indices = @transform_1, window_bounds = array<i64: 9, 37>}, {pipeline_mode = #tpu.pipeline_mode<synchronous>, transform_indices = @transform_2, window_bounds = array<i64: 8, 2>}, {transform_indices = @transform_3, window_bounds = array<i64: 1, 8, 256>}]} {
    %c0 = arith.constant 0 : index
    %c0_0 = arith.constant 0 : index
    %c0_1 = arith.constant 0 : index
    %0 = vector.load %arg1[%c0, %c0_0, %c0_1] : memref<1x4x256xf32, #tpu.memory_space<vmem>>, vector<1x4x256xf32>
    %1 = vector.shape_cast %0 : vector<1x4x256xf32> to vector<4x256xf32>
    %2 = tpu.iota {dimensions = array<i32: 1>} : vector<1x256xi32>
    %c255_i32 = arith.constant 255 : i32
    %3 = vector.broadcast %c255_i32 : i32 to vector<1x256xi32>
    %4 = arith.andi %2, %3 : vector<1x256xi32>
    %c4_i32 = arith.constant 4 : i32
    %5 = vector.broadcast %c4_i32 : i32 to vector<1x256xi32>
    %6 = arith.shrsi %4, %5 : vector<1x256xi32>
    %c15_i32 = arith.constant 15 : i32
    %7 = vector.broadcast %c15_i32 : i32 to vector<1x256xi32>
    %8 = arith.andi %4, %7 : vector<1x256xi32>
    %cst = arith.constant 1.000000e+00 : f32
    %9 = vector.broadcast %cst : f32 to vector<1x256xf32>
    %cst_2 = arith.constant 0.000000e+00 : f32
    %10 = vector.broadcast %cst_2 : f32 to vector<1x256xf32>
    %c1_i32 = arith.constant 1 : i32
    %11 = vector.broadcast %c1_i32 : i32 to vector<1x256xi32>
    %12 = arith.cmpi sge, %6, %11 : vector<1x256xi32>
    %13 = arith.select %12, %9, %10 : vector<1x256xi1>, vector<1x256xf32>
    %c14_i32 = arith.constant 14 : i32
    %14 = vector.broadcast %c14_i32 : i32 to vector<1x256xi32>
    %15 = arith.cmpi sle, %6, %14 : vector<1x256xi32>
    %16 = arith.select %15, %9, %10 : vector<1x256xi1>, vector<1x256xf32>
    %c1_i32_3 = arith.constant 1 : i32
    %17 = vector.broadcast %c1_i32_3 : i32 to vector<1x256xi32>
    %18 = arith.cmpi sge, %8, %17 : vector<1x256xi32>
    %19 = arith.select %18, %9, %10 : vector<1x256xi1>, vector<1x256xf32>
    %c14_i32_4 = arith.constant 14 : i32
    %20 = vector.broadcast %c14_i32_4 : i32 to vector<1x256xi32>
    %21 = arith.cmpi sle, %8, %20 : vector<1x256xi32>
    %22 = arith.select %21, %9, %10 : vector<1x256xi1>, vector<1x256xf32>
    %c17_i32 = arith.constant 17 : i32
    %23 = tpu.dynamic_rotate %1 by %c17_i32 dim 1 : vector<4x256xf32>, i32 -> vector<4x256xf32>
    %24 = arith.mulf %13, %19 : vector<1x256xf32>
    %25 = vector.broadcast %24 : vector<1x256xf32> to vector<4x256xf32>
    %26 = arith.mulf %23, %25 : vector<4x256xf32>
    %c0_5 = arith.constant 0 : index
    %c0_6 = arith.constant 0 : index
    %27 = vector.load %arg5[%c0_5, %c0_6] : memref<37x256xf32, #tpu.memory_space<vmem>>, vector<4x256xf32>
    tpu.vector_store %arg5[%c0_5, %c0_6], %26 {strides = array<i32>} : memref<37x256xf32, #tpu.memory_space<vmem>>, vector<4x256xf32>,
    %c16_i32 = arith.constant 16 : i32
    %28 = tpu.dynamic_rotate %1 by %c16_i32 dim 1 : vector<4x256xf32>, i32 -> vector<4x256xf32>
    %29 = vector.broadcast %13 : vector<1x256xf32> to vector<4x256xf32>
    %30 = arith.mulf %28, %29 : vector<4x256xf32>
    %c4 = arith.constant 4 : index
    %c0_7 = arith.constant 0 : index
    %31 = vector.load %arg5[%c4, %c0_7] : memref<37x256xf32, #tpu.memory_space<vmem>>, vector<4x256xf32>
    tpu.vector_store %arg5[%c4, %c0_7], %30 {strides = array<i32>} : memref<37x256xf32, #tpu.memory_space<vmem>>, vector<4x256xf32>,
    %c15_i32_8 = arith.constant 15 : i32
    %32 = tpu.dynamic_rotate %1 by %c15_i32_8 dim 1 : vector<4x256xf32>, i32 -> vector<4x256xf32>
    %33 = arith.mulf %13, %22 : vector<1x256xf32>
    %34 = vector.broadcast %33 : vector<1x256xf32> to vector<4x256xf32>
    %35 = arith.mulf %32, %34 : vector<4x256xf32>
    %c8 = arith.constant 8 : index
    %c0_9 = arith.constant 0 : index
    %36 = vector.load %arg5[%c8, %c0_9] : memref<37x256xf32, #tpu.memory_space<vmem>>, vector<4x256xf32>
    tpu.vector_store %arg5[%c8, %c0_9], %35 {strides = array<i32>} : memref<37x256xf32, #tpu.memory_space<vmem>>, vector<4x256xf32>,
    %c1_i32_10 = arith.constant 1 : i32
    %37 = tpu.dynamic_rotate %1 by %c1_i32_10 dim 1 : vector<4x256xf32>, i32 -> vector<4x256xf32>
    %38 = vector.broadcast %19 : vector<1x256xf32> to vector<4x256xf32>
    %39 = arith.mulf %37, %38 : vector<4x256xf32>
    %c12 = arith.constant 12 : index
    %c0_11 = arith.constant 0 : index
    %40 = vector.load %arg5[%c12, %c0_11] : memref<37x256xf32, #tpu.memory_space<vmem>>, vector<4x256xf32>
    tpu.vector_store %arg5[%c12, %c0_11], %39 {strides = array<i32>} : memref<37x256xf32, #tpu.memory_space<vmem>>, vector<4x256xf32>,
    %c16 = arith.constant 16 : index
    %c0_12 = arith.constant 0 : index
    %41 = vector.load %arg5[%c16, %c0_12] : memref<37x256xf32, #tpu.memory_space<vmem>>, vector<4x256xf32>
    tpu.vector_store %arg5[%c16, %c0_12], %1 {strides = array<i32>} : memref<37x256xf32, #tpu.memory_space<vmem>>, vector<4x256xf32>,
    %c255_i32_13 = arith.constant 255 : i32
    %42 = tpu.dynamic_rotate %1 by %c255_i32_13 dim 1 : vector<4x256xf32>, i32 -> vector<4x256xf32>
    %43 = vector.broadcast %22 : vector<1x256xf32> to vector<4x256xf32>
    %44 = arith.mulf %42, %43 : vector<4x256xf32>
    %c20 = arith.constant 20 : index
    %c0_14 = arith.constant 0 : index
    %45 = vector.load %arg5[%c20, %c0_14] : memref<37x256xf32, #tpu.memory_space<vmem>>, vector<4x256xf32>
    tpu.vector_store %arg5[%c20, %c0_14], %44 {strides = array<i32>} : memref<37x256xf32, #tpu.memory_space<vmem>>, vector<4x256xf32>,
    %c241_i32 = arith.constant 241 : i32
    %46 = tpu.dynamic_rotate %1 by %c241_i32 dim 1 : vector<4x256xf32>, i32 -> vector<4x256xf32>
    %47 = arith.mulf %16, %19 : vector<1x256xf32>
    %48 = vector.broadcast %47 : vector<1x256xf32> to vector<4x256xf32>
    %49 = arith.mulf %46, %48 : vector<4x256xf32>
    %c24 = arith.constant 24 : index
    %c0_15 = arith.constant 0 : index
    %50 = vector.load %arg5[%c24, %c0_15] : memref<37x256xf32, #tpu.memory_space<vmem>>, vector<4x256xf32>
    tpu.vector_store %arg5[%c24, %c0_15], %49 {strides = array<i32>} : memref<37x256xf32, #tpu.memory_space<vmem>>, vector<4x256xf32>,
    %c240_i32 = arith.constant 240 : i32
    %51 = tpu.dynamic_rotate %1 by %c240_i32 dim 1 : vector<4x256xf32>, i32 -> vector<4x256xf32>
    %52 = vector.broadcast %16 : vector<1x256xf32> to vector<4x256xf32>
    %53 = arith.mulf %51, %52 : vector<4x256xf32>
    %c28 = arith.constant 28 : index
    %c0_16 = arith.constant 0 : index
    %54 = vector.load %arg5[%c28, %c0_16] : memref<37x256xf32, #tpu.memory_space<vmem>>, vector<4x256xf32>
    tpu.vector_store %arg5[%c28, %c0_16], %53 {strides = array<i32>} : memref<37x256xf32, #tpu.memory_space<vmem>>, vector<4x256xf32>,
    %c239_i32 = arith.constant 239 : i32
    %55 = tpu.dynamic_rotate %1 by %c239_i32 dim 1 : vector<4x256xf32>, i32 -> vector<4x256xf32>
    %56 = arith.mulf %16, %22 : vector<1x256xf32>
    %57 = vector.broadcast %56 : vector<1x256xf32> to vector<4x256xf32>
    %58 = arith.mulf %55, %57 : vector<4x256xf32>
    %c32 = arith.constant 32 : index
    %c0_17 = arith.constant 0 : index
    %59 = vector.load %arg5[%c32, %c0_17] : memref<37x256xf32, #tpu.memory_space<vmem>>, vector<4x256xf32>
    tpu.vector_store %arg5[%c32, %c0_17], %58 {strides = array<i32>} : memref<37x256xf32, #tpu.memory_space<vmem>>, vector<4x256xf32>,
    %c36 = arith.constant 36 : index
    %c0_18 = arith.constant 0 : index
    %60 = vector.load %arg5[%c36, %c0_18] : memref<37x256xf32, #tpu.memory_space<vmem>>, vector<1x256xf32>
    tpu.vector_store %arg5[%c36, %c0_18], %9 {strides = array<i32>} : memref<37x256xf32, #tpu.memory_space<vmem>>, vector<1x256xf32>,
    %c0_19 = arith.constant 0 : index
    %c0_20 = arith.constant 0 : index
    %61 = vector.load %arg2[%c0_19, %c0_20] : memref<9x37xf32, #tpu.memory_space<vmem>>, vector<9x37xf32>
    %c0_21 = arith.constant 0 : index
    %c0_22 = arith.constant 0 : index
    %62 = vector.load %arg5[%c0_21, %c0_22] : memref<37x256xf32, #tpu.memory_space<vmem>>, vector<37x256xf32>
    %cst_23 = arith.constant dense<0.000000e+00> : vector<9x256xf32>
    %63 = tpu.matmul %61, %62, %cst_23 {dimension_numbers = #tpu.dot_dimension_numbers<[1], [0], [0], [1], [0, 0, 1, 1], [], []>} : vector<9x37xf32>, vector<37x256xf32>, vector<9x256xf32> -> vector<9x256xf32>
    %64 = vector.extract_strided_slice %63 {offsets = [0, 0], sizes = [8, 256], strides = [1, 1]} : vector<9x256xf32> to vector<8x256xf32>
    %65 = vector.extract_strided_slice %63 {offsets = [8, 0], sizes = [1, 256], strides = [1, 1]} : vector<9x256xf32> to vector<1x256xf32>
    %66 = arith.mulf %64, %64 : vector<8x256xf32>
    %cst_24 = arith.constant dense<0.000000e+00> : vector<256xf32>
    %67 = vector.multi_reduction <add>, %66, %cst_24 [0] : vector<8x256xf32> to vector<256xf32>
    %68 = vector.shape_cast %67 : vector<256xf32> to vector<1x256xf32>
    %cst_25 = arith.constant 1.250000e-01 : f32
    %69 = vector.broadcast %cst_25 : f32 to vector<1x256xf32>
    %70 = arith.mulf %68, %69 : vector<1x256xf32>
    %71 = arith.mulf %65, %65 : vector<1x256xf32>
    %72 = arith.subf %70, %71 : vector<1x256xf32>
    %cst_26 = arith.constant 0.000000e+00 : f32
    %73 = vector.broadcast %cst_26 : f32 to vector<1x256xf32>
    %74 = arith.maximumf %72, %73 : vector<1x256xf32>
    %cst_27 = arith.constant 9.99999997E-7 : f32
    %75 = vector.broadcast %cst_27 : f32 to vector<1x256xf32>
    %76 = arith.addf %74, %75 : vector<1x256xf32>
    %77 = math.rsqrt %76 : vector<1x256xf32>
    %c0_28 = arith.constant 0 : index
    %c0_29 = arith.constant 0 : index
    %78 = vector.load %arg3[%c0_28, %c0_29] : memref<8x2xf32, #tpu.memory_space<vmem>>, vector<8x1xf32>
    %c0_30 = arith.constant 0 : index
    %c1 = arith.constant 1 : index
    %79 = vector.load %arg3[%c0_30, %c1] : memref<8x2xf32, #tpu.memory_space<vmem>>, vector<8x1xf32>
    %80 = vector.broadcast %65 : vector<1x256xf32> to vector<8x256xf32>
    %81 = arith.subf %64, %80 : vector<8x256xf32>
    %82 = vector.broadcast %77 : vector<1x256xf32> to vector<8x256xf32>
    %83 = arith.mulf %81, %82 : vector<8x256xf32>
    %84 = vector.broadcast %78 : vector<8x1xf32> to vector<8x256xf32>
    %85 = arith.mulf %83, %84 : vector<8x256xf32>
    %86 = vector.broadcast %79 : vector<8x1xf32> to vector<8x256xf32>
    %87 = arith.addf %85, %86 : vector<8x256xf32>
    %cst_31 = arith.constant 5.000000e-01 : f32
    %88 = vector.broadcast %cst_31 : f32 to vector<8x256xf32>
    %89 = arith.mulf %88, %87 : vector<8x256xf32>
    %cst_32 = arith.constant 0.707106769 : f32
    %90 = vector.broadcast %cst_32 : f32 to vector<8x256xf32>
    %91 = arith.mulf %87, %90 : vector<8x256xf32>
    %cst_33 = arith.constant -4.000000e+00 : f32
    %cst_34 = arith.constant 4.000000e+00 : f32
    %92 = vector.broadcast %cst_33 : f32 to vector<8x256xf32>
    %93 = arith.maximumf %92, %91 : vector<8x256xf32>
    %94 = vector.broadcast %cst_34 : f32 to vector<8x256xf32>
    %95 = arith.minimumf %94, %93 : vector<8x256xf32>
    %96 = arith.mulf %95, %95 : vector<8x256xf32>
    %cst_35 = arith.constant -2.72614237E-10 : f32
    %97 = vector.broadcast %cst_35 : f32 to vector<8x256xf32>
    %98 = arith.mulf %97, %96 : vector<8x256xf32>
    %cst_36 = arith.constant 2.77068146E-8 : f32
    %99 = vector.broadcast %cst_36 : f32 to vector<8x256xf32>
    %100 = arith.addf %98, %99 : vector<8x256xf32>
    %101 = arith.mulf %100, %96 : vector<8x256xf32>
    %cst_37 = arith.constant -2.10102394E-6 : f32
    %102 = vector.broadcast %cst_37 : f32 to vector<8x256xf32>
    %103 = arith.addf %101, %102 : vector<8x256xf32>
    %104 = arith.mulf %103, %96 : vector<8x256xf32>
    %cst_38 = arith.constant -5.69250624E-5 : f32
    %105 = vector.broadcast %cst_38 : f32 to vector<8x256xf32>
    %106 = arith.addf %104, %105 : vector<8x256xf32>
    %107 = arith.mulf %106, %96 : vector<8x256xf32>
    %cst_39 = arith.constant -7.34990637E-4 : f32
    %108 = vector.broadcast %cst_39 : f32 to vector<8x256xf32>
    %109 = arith.addf %107, %108 : vector<8x256xf32>
    %110 = arith.mulf %109, %96 : vector<8x256xf32>
    %cst_40 = arith.constant -2.954600e-03 : f32
    %111 = vector.broadcast %cst_40 : f32 to vector<8x256xf32>
    %112 = arith.addf %110, %111 : vector<8x256xf32>
    %113 = arith.mulf %112, %96 : vector<8x256xf32>
    %cst_41 = arith.constant -0.0160960332 : f32
    %114 = vector.broadcast %cst_41 : f32 to vector<8x256xf32>
    %115 = arith.addf %113, %114 : vector<8x256xf32>
    %cst_42 = arith.constant -1.45660715E-5 : f32
    %116 = vector.broadcast %cst_42 : f32 to vector<8x256xf32>
    %117 = arith.mulf %116, %96 : vector<8x256xf32>
    %cst_43 = arith.constant -2.13374049E-4 : f32
    %118 = vector.broadcast %cst_43 : f32 to vector<8x256xf32>
    %119 = arith.addf %117, %118 : vector<8x256xf32>
    %120 = arith.mulf %119, %96 : vector<8x256xf32>
    %cst_44 = arith.constant -0.00168282702 : f32
    %121 = vector.broadcast %cst_44 : f32 to vector<8x256xf32>
    %122 = arith.addf %120, %121 : vector<8x256xf32>
    %123 = arith.mulf %122, %96 : vector<8x256xf32>
    %cst_45 = arith.constant -0.00737332925 : f32
    %124 = vector.broadcast %cst_45 : f32 to vector<8x256xf32>
    %125 = arith.addf %123, %124 : vector<8x256xf32>
    %126 = arith.mulf %125, %96 : vector<8x256xf32>
    %cst_46 = arith.constant -0.0142647391 : f32
    %127 = vector.broadcast %cst_46 : f32 to vector<8x256xf32>
    %128 = arith.addf %126, %127 : vector<8x256xf32>
    %129 = arith.mulf %95, %115 : vector<8x256xf32>
    %130 = arith.divf %129, %128 : vector<8x256xf32>
    %cst_47 = arith.constant 1.000000e+00 : f32
    %131 = vector.broadcast %cst_47 : f32 to vector<8x256xf32>
    %132 = arith.addf %131, %130 : vector<8x256xf32>
    %133 = arith.mulf %89, %132 : vector<8x256xf32>
    %c0_48 = arith.constant 0 : index
    %c0_49 = arith.constant 0 : index
    %c0_50 = arith.constant 0 : index
    %134 = vector.load %arg4[%c0_48, %c0_49, %c0_50] : memref<1x8x256xf32, #tpu.memory_space<vmem>>, vector<1x8x256xf32>
    %135 = vector.shape_cast %134 : vector<1x8x256xf32> to vector<8x256xf32>
    %136 = vector.shape_cast %133 : vector<8x256xf32> to vector<1x8x256xf32>
    tpu.vector_store %arg4[%c0_48, %c0_49, %c0_50], %136 {strides = array<i32>} : memref<1x8x256xf32, #tpu.memory_space<vmem>>, vector<1x8x256xf32>,
    return
  }
  func.func @transform_0(%arg0: i32) -> (i32, i32, i32) {
    %c0_i32 = arith.constant 0 : i32
    %c0_i32_0 = arith.constant 0 : i32
    %c0_i32_1 = arith.constant 0 : i32
    return %arg0, %c0_i32, %c0_i32_0 : i32, i32, i32
  }
  func.func @transform_1(%arg0: i32) -> (i32, i32) {
    %c0_i32 = arith.constant 0 : i32
    %c0_i32_0 = arith.constant 0 : i32
    %c0_i32_1 = arith.constant 0 : i32
    return %c0_i32, %c0_i32_0 : i32, i32
  }
  func.func @transform_2(%arg0: i32) -> (i32, i32) {
    %c0_i32 = arith.constant 0 : i32
    %c0_i32_0 = arith.constant 0 : i32
    %c0_i32_1 = arith.constant 0 : i32
    return %c0_i32, %c0_i32_0 : i32, i32
  }
  func.func @transform_3(%arg0: i32) -> (i32, i32, i32) {
    %c0_i32 = arith.constant 0 : i32
    %c0_i32_0 = arith.constant 0 : i32
    %c0_i32_1 = arith.constant 0 : i32
    return %arg0, %c0_i32, %c0_i32_0 : i32, i32, i32
  }
}

</mosaic_0001>

<bundles_post_ra>
// kernel: tpu_custom_call.1
= control target key start
LH: loop header
LB: loop body
LE: loop exit
PB: predicated region body
PF: predicated region fallthrough
CT: control target
= control target key end

     0   :  { %6 = vsyncpa [#allocation3], 0  ;;  %s118_s0 = inlined_call_operand.hbm [shape: f32[8,128], index: 0, kind: input, shape index: {}]   ;;  %s119_s1 = inlined_call_operand.hbm [shape: f32[8,128], index: 1, kind: output, shape index: {}]  }
   0x1   :  { %7 = vsyncpa [#allocation4], 0  ;;  %s13_s8 = sshll.u32 %s118_s0, 4  ;;  %s99_s9 = smov [#allocation2]   ;;  %s14_s8 = int_to_ptr.hbm [resolvable:$true] %s13_s8 }
   0x2   :  { %s15_s10 = sshll.u32 %s99_s9, 4  ;;  %s16_s10 = int_to_ptr.vmem [resolvable:$true] %s15_s10 }
   0x3   :  { %18 = dma.hbm_to_vmem [thread:$0]  %s14_s8, 128, %s16_s10, [#allocation3]  }
   0x4   :  { %95 = dma.done.wait [#allocation3], 128  }
   0x5   :  { %96 = vsyncadd [#allocation3], 4294967168  ;;  %v23_v0 = vld [vmem:[#allocation2] sm:$0xff]  ;;  %s100_s11 = smov 1   ;;  %s101_s12 = smov [#allocation5]  }
   0x6   :  { %24 = vrot.lane.b32.xlu0 %v23_v0, %s100_s11  ;;  %s32_s13 = sshll.u32 %s101_s12, 4  ;;  %s34_s16 = sshll.u32 %s119_s1, 4  ;;  %s33_s13 = int_to_ptr.vmem [resolvable:$true] %s32_s13  ;;  %s35_s16 = int_to_ptr.hbm [resolvable:$true] %s34_s16 }
  0x78   :  { %v25_v1 = vpop.permute.xlu0 %24 }
  0x79   :  { %26 = vst [vmem:[#allocation5] sm:$0xff] %v25_v1 }
  0x7a   :  { %37 = dma.vmem_to_hbm [thread:$0]  %s33_s13, 128, %s35_s16, [#allocation4]  }
  0x7b   :  { %97 = dma.done.wait [#allocation4], 128  }
  0x7c   :  { %98 = vsyncadd [#allocation4], 4294967168 }
  0x7d   :  { %42 = vsyncpa [#allocation3], 1 }
  0x7e   :  { %43 = vsyncpa [#allocation4], 1 }

// kernel: tpu_custom_call.1
= control target key start
LH: loop header
LB: loop body
LE: loop exit
PB: predicated region body
PF: predicated region fallthrough
CT: control target
= control target key end

     0   :  { %8 = vsyncpa [#allocation4], 0  ;;  %s1223_s0 = inlined_call_operand.hbm [shape: f32[2,4,256], index: 0, kind: input, shape index: {}]   ;;  %s1224_s1 = inlined_call_operand.hbm [shape: f32[9,37], index: 1, kind: input, shape index: {}]   ;;  %s1225_s2 = inlined_call_operand.vmem [shape: f32[8,2], index: 2, kind: input, shape index: {}]   ;;  %s1226_s3 = inlined_call_operand.hbm [shape: f32[2,8,256], index: 3, kind: output, shape index: {}]  }
   0x1   :  { %10 = vsyncpa [#allocation4 + $0x1], 0 }
   0x2   :  { %11 = vsyncpa [#allocation7], 0 }
   0x3   :  { %12 = vsyncpa [#allocation5], 0 }
   0x4   :  { %14 = vsyncpa [#allocation5 + $0x1], 0  ;;  %s1015_s12 = smov 0   ;;  %s1017_s13 = smov 0  }
   0x5   :  { %s1019_s14 = smov 0   ;;  %s1021_s15 = smov 0  }
   0x6 LB: > { %s130_s18 = sshll.u32 %s1224_s1, 4  ;;  %s1039_s19 = sadd.s32 4294967295, %s978_s15   ;;  %s978_s15 = sphi %s1021_s15, %s1236_s15   ;;  %s974_s14 = sphi %s1019_s14, %s1235_s14   ;;  %s970_s13 = sphi %s1017_s13, %s1234_s13   ;;  %s966_s12 = sphi %s1015_s12, %s1233_s12   ;;  %s131_s18 = int_to_ptr.hbm [resolvable:$true] %s130_s18 }
   0x7   : > { %p731_p0 = scmp.ge.s32.totalorder %s978_s15, 1  ;;  %p41_p1 = scmp.eq.s32.totalorder %s1039_s19, 0 }
   0x8   : > { %p119_p2 = scmp.lt.s32.totalorder %s978_s15, 3  ;;  %s980_s21 = smov [#allocation6]  }
   0x9   : > { %s132_s22 = sshll.u32 %s980_s21, 4  ;;  %s981_s23 = smov 128   ;;  %s133_s22 = int_to_ptr.vmem [resolvable:$true] %s132_s22 }
   0xa   : > { %p1044_p3 = pnand %p731_p0, %p119_p2  ;;  %s982_s24 = smov 8  }
   0xb   : > { %s730_s25 = sadd.s32 4294967294, %s978_s15   ;;  %s1055_s26 = sadd.s32 1, %s978_s15  }
   0xc   : > { %p774_p4 = pneg %p1044_p3  ;;  %s27_s27 = sadd.s32 1, %s974_s14 }
   0xd   : > { %s24_s28 = ssub.s32 %s978_s15, %s1055_s26  ;;  %p34_p7 = scmp.ne.s32.totalorder %s974_s14, %s970_s13 }
   0xe   : > { %p775_p6 = pnand %p774_p4, %p41_p1  ;;  %p25_p8 = scmp.eq.s32.totalorder %s24_s28, 0 }
   0xf   : > { %p35_p9 = scmp.eq.s32.totalorder %s978_s15, 0  ;;  %p40_p10 = scmp.ne.s32.totalorder %s970_s13, %s966_s12 }
  0x10   : > { %777 = dma.hbm_to_vmem [thread:$0]  (!%p775_p6), %s131_s18, 256, %s133_s22, [#allocation7], %s981_s23, %s981_s23, %s982_s24  }
  0x11   : > { %p106_p11 = scmp.eq.s32.totalorder %s1039_s19, 1  ;;  %p1071_p12 = por %p41_p1, %p40_p10 }
  0x12   : > { %s1067_s29 = scalar_select %p25_p8, %s974_s14, %s27_s27  }
  0x13   : > { %p1075_p13 = por %p106_p11, %p34_p7  ;;  %p112_p0 = scmp.eq.s32.totalorder %s730_s25, 1 }
  0x14   : > { %p36_p2 = por %p35_p9, %p34_p7  ;;  %s149_s5 = sand.u32 1, %s974_s14  }
  0x15   : > { %p1080_p4 = por %p112_p0, %p40_p10  ;;  %p787_p6 = scmp.lt.s32.totalorder %s978_s15, 2 }
  0x16   : > { %s734_s7 = sshll.u32 %s149_s5, 3  ;;  %s754_s8 = sshll.u32 %s978_s15, 3 }
  0x17   : > { %s158_s11 = scalar_lea.hbm %s1223_s0, %s754_s8  ;;  %s153_s17 = scalar_lea.vmem [#allocation3], %s734_s7 }
  0x18   : > { %s160_s16 = sshll.u32 %s158_s11, 4  ;;  %s162_s18 = sshll.u32 %s153_s17, 4  ;;  %s161_s16 = int_to_ptr.hbm [resolvable:$true] %s160_s16  ;;  %s163_s18 = int_to_ptr.vmem [resolvable:$true] %s162_s18 }
  0x19   : > { %p1089_p8 = pnand %p787_p6, %p36_p2  ;;  %s150_s22 = scalar_lea.sflag [#allocation4], %s149_s5 }
  0x1a   : > { %s878_s23 = sshra.s32 %s161_s16, 4  ;;  %s885_s28 = scalar_lea.hbm %s1223_s0, 16  ;;  %s879_s23 = int_to_ptr.hbm [resolvable:$true] %s878_s23 }
  0x1b   : > { %s880_s24 = scalar_lea.hbm %s879_s23, 8  ;;  %p882_p9 = pneg %p1089_p8 }
  0x1c   : > { %p881_p7 = scmp.ne.s32.totalorder %s879_s23, %s880_s24  ;;  %p886_p0 = scmp.lt.s32.totalorder %s879_s23, %s1223_s0 }
  0x1d   : > { %p887_p2 = scmp.lt.s32.totalorder %s885_s28, %s880_s24 }
  0x1e   : > { %p883_p10 = pnand %p882_p9, %p881_p7 }
  0x1f   : > { %p888_p6 = por %p887_p2, %p886_p0 }
  0x20   : > { %p884_p11 = pneg %p883_p10 }
  0x22   : > { %p889_p5 = pnand %p888_p6, %p884_p11 }
  0x24   : > { %892 = shalt.err (!%p889_p5)
}
  0x25   : > { %781 = dma.hbm_to_vmem [thread:$0]  (!%p1089_p8), %s161_s16, 128, %s163_s18, %s150_s22  }
  0x26   : > { %171 = sbr.rel (%p1044_p3) target bundleno = 488 (0x1e8), region = 32  ;;  %s1106_s5 = sand.u32 (!%p1044_p3), 1, %s970_s13  }
  0x27   : > { %s738_s9 = sshll.u32 (!%p1044_p3), %s1106_s5, 3  ;;  %s174_s10 = scalar_lea.sflag (!%p1044_p3), [#allocation4], %s1106_s5 }
  0x28   : > { %s177_s11 = scalar_lea.vmem (!%p1044_p3), [#allocation3], %s738_s9 }
  0x2b   : > { %953 = dma.done.wait (%p1071_p12), %s174_s10, 128  }
  0x2c   : > { %955 = vsyncadd (%p1071_p12), %s174_s10, 4294967168 }
  0x2d   : > { %957 = dma.done.wait (%p41_p1), [#allocation7], 256  }
  0x2e   : > { %959 = vsyncadd (%p41_p1), [#allocation7], 4294967040  ;;  %v206_v0 = vld [vmem:[%s177_s11] sm:$0xff]  ;;  %s983_s20 = smov 16   ;;  %s984_s30 = smov 15   ;;  %v207_v19 = vlaneseq  ;;  %v991_v28 = vmov 0.0  }
  0x2f   : > { %233 = vst [vmem:[#allocation1] ss:$2 sm:$0xff] %v206_v0  ;;  %s985_s16 = smov 1   ;;  %s986_s17 = smov 127  }
  0x30   : > { %s987_s18 = smov 113   ;;  %s988_s21 = smov 112   ;;  %v1121_v20 = vand.u32 127, %v207_v19  ;;  %vm402_vm12 = vcmp.lt.s32.totalorder %v207_v19, 256 }
  0x31   : > { %s989_s22 = smov 17   ;;  %s990_s23 = smov 111  }
  0x32   : > { %v209_v22 = vadd.s32 128, %v1121_v20  ;;  %v210_v23 = vand.u32 255, %v1121_v20  ;;  %vm260_vm2 = vcmp.lt.s32.totalorder %v1121_v20, 16  ;;  %vm300_vm5 = vcmp.lt.s32.totalorder %v1121_v20, 1  ;;  %s740_s27 = sshll.u32 %s1106_s5, 4  ;;  %s755_s28 = sshll.u32 %s1039_s19, 4 }
  0x33   : > { %vm329_vm8 = vcmp.lt.s32.totalorder %v1121_v20, 127  ;;  %vm351_vm11 = vcmp.lt.s32.totalorder %v1121_v20, 113  ;;  %vm369_vm13 = vcmp.lt.s32.totalorder %v1121_v20, 112  ;;  %vm242_vm14 = vcmp.lt.s32.totalorder %v1121_v20, 17  ;;  %s645_s9 = scalar_lea.hbm %s1226_s3, %s755_s28  ;;  %s205_s19 = scalar_lea.vmem [#allocation8], %s740_s27 }
  0x34   : > { %v211_v24 = vand.u32 255, %v209_v22  ;;  %v212_v25 = vshra.s32 %v210_v23, 4  ;;  %v214_v39 = vand.u32 15, %v210_v23  ;;  %vm391_vm15 = vcmp.lt.s32.totalorder %v1121_v20, 111  ;;  %s647_s10 = sshll.u32 %s205_s19, 4  ;;  %s649_s11 = sshll.u32 %s645_s9, 4  ;;  %s648_s10 = int_to_ptr.vmem [resolvable:$true] %s647_s10  ;;  %s650_s11 = int_to_ptr.hbm [resolvable:$true] %s649_s11 }
  0x36   : > { %v234_v1 = vld.sshfl [vmem:[#allocation1] sm:$0xff pattern:$0x75316420]  ;;  %v235_v2 = vld.sshfl [vmem:[#allocation1 + $0x8] sm:$0xff pattern:$0x75316420] }
  0x37   : > { %251 = vst [vmem:[#allocation1] ss:$2 sm:$0xff] %v206_v0  ;;  %v213_v26 = vshra.s32 %v211_v24, 4  ;;  %vm216_vm0 = vcmp.ge.s32.totalorder %v212_v25, 1  ;;  %v215_v40 = vand.u32 15, %v211_v24  ;;  %vm224_vm3 = vcmp.ge.s32.totalorder %v214_v39, 1 }
  0x38   : > { %v1126_v29 = vsel %vm216_vm0, 1.0, %v991_v28  ;;  %v1135_v42 = vsel %vm224_vm3, 1.0, %v991_v28  ;;  %vm228_vm6 = vcmp.le.s32.totalorder %v214_v39, 14  ;;  %vm220_vm9 = vcmp.le.s32.totalorder %v212_v25, 14 }
  0x39   : > { %vm217_vm1 = vcmp.ge.s32.totalorder %v213_v26, 1  ;;  %vm225_vm4 = vcmp.ge.s32.totalorder %v215_v40, 1  ;;  %vm229_vm7 = vcmp.le.s32.totalorder %v215_v40, 14  ;;  %v1140_v47 = vsel %vm228_vm6, 1.0, %v991_v28 }
  0x3a   : > { %v1128_v30 = vsel %vm217_vm1, 1.0, %v991_v28  ;;  %v1137_v43 = vsel %vm225_vm4, 1.0, %v991_v28  ;;  %v1142_v48 = vsel %vm229_vm7, 1.0, %v991_v28  ;;  %vm221_vm10 = vcmp.le.s32.totalorder %v213_v26, 14 }
  0x3b   : > { %v222_v60 = vsel %vm220_vm9, 1.0, %v991_v28  ;;  %v223_v61 = vsel %vm221_vm10, 1.0, %v991_v28  ;;  %v246_v22 = vmul.f32 %v1137_v43, %v1128_v30  ;;  %vm282_vm0 = vcmp.lt.s32.totalorder %v1121_v20, 15 }
  0x3c   : > { %v354_v62 = vmul.f32 %v1135_v42, %v222_v60  ;;  %v355_v63 = vmul.f32 %v1137_v43, %v223_v61  ;;  %v394_v23 = vmul.f32 %v1140_v47, %v222_v60  ;;  %v395_v24 = vmul.f32 %v1142_v48, %v223_v61 }
  0x3d   : > { %v286_v39 = vmul.f32 %v1142_v48, %v1128_v30  ;;  %vm426_vm1 = vcmask 1044480  }
  0x3e   : > { %v252_v3 = vld.sshfl [vmem:[#allocation1] sm:$0xff pattern:$0x75316420]  ;;  %v253_v4 = vld.sshfl [vmem:[#allocation1 + $0x8] sm:$0xff pattern:$0x75316420] }
  0x3f   : > { %273 = vst [vmem:[#allocation1] ss:$2 sm:$0xff] %v206_v0  ;;  %256 = vrot.lane.b32.xlu1 %v252_v3, %s983_s20  ;;  %258 = vrot.lane.b32.xlu2 %v253_v4, %s983_s20  ;;  %s634_s20 = scalar_lea.sflag [#allocation5], %s1106_s5 }
  0x46   : > { %v274_v5 = vld.sshfl [vmem:[#allocation1] sm:$0xff pattern:$0x75316420]  ;;  %v275_v6 = vld.sshfl [vmem:[#allocation1 + $0x8] sm:$0xff pattern:$0x75316420] }
  0x47   : > { %278 = vrot.lane.b32.xlu0 %v274_v5, %s984_s30  ;;  %291 = vst [vmem:[#allocation1] ss:$2 sm:$0xff] %v206_v0 }
  0x4e   : > { %v292_v7 = vld.sshfl [vmem:[#allocation1] sm:$0xff pattern:$0x75316420]  ;;  %v293_v8 = vld.sshfl [vmem:[#allocation1 + $0x8] sm:$0xff pattern:$0x75316420] }
  0x4f   : > { %298 = vrot.lane.b32.xlu0 %v293_v8, %s985_s16  ;;  %313 = vst [vmem:[#allocation1] ss:$2 sm:$0xff] %v206_v0  ;;  %296 = vrot.lane.b32.xlu2 %v292_v7, %s985_s16 }
  0x56   : > { %v314_v9 = vld.sshfl [vmem:[#allocation1] sm:$0xff pattern:$0x75316420]  ;;  %v315_v10 = vld.sshfl [vmem:[#allocation1 + $0x8] sm:$0xff pattern:$0x75316420] }
  0x57   : > { %320 = vst [vmem:[#allocation1] ss:$2 sm:$0xff] %v206_v0 }
  0x58   : > { %318 = vst [vmem:[#allocation2 + $0x20] sm:$0xf] %v314_v9 }
  0x59   : > { %319 = vst [vmem:[#allocation2 + $0x28] sm:$0xf] %v315_v10 }
  0x5e   : > { %v321_v11 = vld.sshfl [vmem:[#allocation1] sm:$0xff pattern:$0x75316420]  ;;  %v322_v12 = vld.sshfl [vmem:[#allocation1 + $0x8] sm:$0xff pattern:$0x75316420] }
  0x5f   : > { %342 = vst [vmem:[#allocation1] ss:$2 sm:$0xff] %v206_v0  ;;  %325 = vrot.lane.b32.xlu2 %v321_v11, %s986_s17 }
  0x66   : > { %v343_v13 = vld.sshfl [vmem:[#allocation1] sm:$0xff pattern:$0x75316420]  ;;  %v344_v14 = vld.sshfl [vmem:[#allocation1 + $0x8] sm:$0xff pattern:$0x75316420] }
  0x67   : > { %347 = vrot.lane.b32.xlu0 %v343_v13, %s987_s18  ;;  %349 = vrot.lane.b32.xlu1 %v344_v14, %s987_s18  ;;  %360 = vst [vmem:[#allocation1] ss:$2 sm:$0xff] %v206_v0 }
  0x68   : > { %327 = vrot.lane.b32.xlu2 %v322_v12, %s986_s17  ;;  %v523_v12 = vld [vmem:[%s1225_s2] sm:$0xff] }
  0x6e   : > { %v361_v15 = vld.sshfl [vmem:[#allocation1] sm:$0xff pattern:$0x75316420]  ;;  %v362_v16 = vld.sshfl [vmem:[#allocation1 + $0x8] sm:$0xff pattern:$0x75316420] }
  0x6f   : > { %365 = vrot.lane.b32.xlu0 %v361_v15, %s988_s21  ;;  %382 = vst [vmem:[#allocation1] ss:$2 sm:$0xff] %v206_v0  ;;  %v992_v0 = vmov 1.0   ;;  %v993_v15 = vmov 0  }
  0x70   : > { %238 = vrot.lane.b32.xlu2 %v234_v1, %s989_s22  ;;  %405 = vst.msk [vmem:[#allocation2 + $0x44] ss:$8 sm:$0x3] %vm402_vm12, %v992_v0  ;;  %837 = vset.pattern.permute.xlu1 %v993_v15 }
  0x76   : > { %v383_v17 = vld.sshfl [vmem:[#allocation1] sm:$0xff pattern:$0x75316420]  ;;  %v384_v18 = vld.sshfl [vmem:[#allocation1 + $0x8] sm:$0xff pattern:$0x75316420] }
  0x77   : > { %367 = vrot.lane.b32.xlu0 %v362_v16, %s988_s21  ;;  %387 = vrot.lane.b32.xlu1 %v383_v17, %s990_s23  ;;  %v994_v16 = vmov 1   ;;  %s928_s21 = scalar_lea.hbm %s1226_s3, 32 }
  0x78   : > { %838 = vset.pattern.permute.xlu2 %v994_v16  ;;  %839 = vset.pattern.permute.xlu0 %v994_v16 }
  0x79   : > { %540 = vperm.xlu2 %838, %v523_v12  }
  0x7f   : > { %240 = vrot.lane.b32.xlu0 %v235_v2, %s989_s22  ;;  %389 = vrot.lane.b32.xlu1 %v384_v18, %s990_s23 }
  0x87   : > { %280 = vrot.lane.b32.xlu1 %v275_v6, %s984_s30  ;;  %s922_s30 = sshra.s32 %s650_s11, 4  ;;  %s923_s30 = int_to_ptr.hbm [resolvable:$true] %s922_s30 }
  0x88   : > { %s924_s16 = scalar_lea.hbm %s923_s30, 16  ;;  %p929_p12 = scmp.lt.s32.totalorder %s923_s30, %s1226_s3 }
  0x89   : > { %p925_p1 = scmp.ne.s32.totalorder %s923_s30, %s924_s16  ;;  %p930_p8 = scmp.lt.s32.totalorder %s928_s21, %s924_s16 }
  0x8b   : > { %p926_p3 = pnand %p925_p1, %p1075_p13  ;;  %p931_p7 = por %p930_p8, %p929_p12 }
  0x8d   : > { %p927_p5 = pneg %p926_p3 }
  0x8f   : > { %534 = vperm.xlu1 %837, %v523_v12   ;;  %p932_p9 = pnand %p931_p7, %p927_p5 }
  0x99   : > { %v259_v21 = vpop.permute.xlu2 %258 }
  0xa9   : > { %v297_v27 = vpop.permute.xlu2 %296 }
  0xb1   : > { %v257_v31 = vpop.permute.xlu1 %256 }
  0xb2   : > { %v261_v32 = vsel %vm260_vm2, %v257_v31, %v259_v21  ;;  %v262_v33 = vsel %vm260_vm2, %v259_v21, %v257_v31  ;;  %v245_v21 = vmul.f32 %v1135_v42, %v1126_v29  ;;  %vm419_vm2 = vcmask 302080  }
  0xb3   : > { %v263_v34 = vmul.f32 %v262_v33, %v1126_v29  ;;  %v264_v35 = vmul.f32 %v261_v32, %v1128_v30 }
  0xb5   : > { %v267_v36 = vrot.slane %v263_v34, 4  ;;  %v268_v37 = vrot.slane %v264_v35, 4 }
  0xb7   : > { %271 = vst [vmem:[#allocation2] sm:$0xf0] %v267_v36 }
  0xb8   : > { %272 = vst [vmem:[#allocation2 + $0x8] sm:$0xf0] %v268_v37  ;;  %v285_v37 = vmul.f32 %v1140_v47, %v1126_v29 }
  0xb9   : > { %v1132_v38 = vpop.permute.xlu0 %278  ;;  %v326_v41 = vpop.permute.xlu2 %325 }
  0xc1   : > { %v299_v44 = vpop.permute.xlu0 %298 }
  0xc2   : > { %v301_v45 = vsel %vm300_vm5, %v297_v27, %v299_v44  ;;  %v302_v46 = vsel %vm300_vm5, %v299_v44, %v297_v27  ;;  %v328_v49 = vpop.permute.xlu2 %327 }
  0xc3   : > { %v303_v50 = vmul.f32 %v302_v46, %v1135_v42  ;;  %v304_v51 = vmul.f32 %v301_v45, %v1137_v43  ;;  %v330_v52 = vsel %vm329_vm8, %v326_v41, %v328_v49  ;;  %v331_v53 = vsel %vm329_vm8, %v328_v49, %v326_v41 }
  0xc4   : > { %v332_v54 = vmul.f32 %v330_v52, %v1140_v47  ;;  %v333_v55 = vmul.f32 %v331_v53, %v1142_v48 }
  0xc5   : > { %v307_v56 = vrot.slane %v303_v50, 4  ;;  %v308_v57 = vrot.slane %v304_v51, 4  ;;  %v407_v50 = vld [vmem:[#allocation6] sm:$0xff]  ;;  %v408_v51 = vld [vmem:[#allocation6 + $0x8] sm:$0x1] }
  0xc6   : > { %v336_v58 = vrot.slane %v332_v54, 4  ;;  %v337_v59 = vrot.slane %v333_v55, 4 }
  0xc7   : > { %311 = vst [vmem:[#allocation2 + $0x10] sm:$0xf0] %v307_v56 }
  0xc8   : > { %312 = vst [vmem:[#allocation2 + $0x18] sm:$0xf0] %v308_v57 }
  0xc9   : > { %340 = vst [vmem:[#allocation2 + $0x20] sm:$0xf0] %v336_v58 }
  0xca   : > { %341 = vst [vmem:[#allocation2 + $0x28] sm:$0xf0] %v337_v59  ;;  %v239_v19 = vpop.permute.xlu2 %238 }
  0xd0   : > { %v413_v46 = vld [vmem:[#allocation2 + $0x20] sm:$0xff] }
  0xd9   : > { %v348_v1 = vpop.permute.xlu0 %347  ;;  %v350_v2 = vpop.permute.xlu1 %349 }
  0xda   : > { %v352_v3 = vsel %vm351_vm11, %v348_v1, %v350_v2  ;;  %v353_v4 = vsel %vm351_vm11, %v350_v2, %v348_v1 }
  0xdb   : > { %v356_v5 = vmul.f32 %v354_v62, %v352_v3  ;;  %v357_v6 = vmul.f32 %v355_v63, %v353_v4 }
  0xdd   : > { %358 = vst [vmem:[#allocation2 + $0x30] sm:$0xf] %v356_v5 }
  0xde   : > { %359 = vst [vmem:[#allocation2 + $0x38] sm:$0xf] %v357_v6 }
  0xe1   : > { %v366_v7 = vpop.permute.xlu0 %365 }
  0xe9   : > { %v368_v8 = vpop.permute.xlu0 %367  ;;  %v388_v9 = vpop.permute.xlu1 %387 }
  0xea   : > { %v370_v10 = vsel %vm369_vm13, %v366_v7, %v368_v8  ;;  %v371_v11 = vsel %vm369_vm13, %v368_v8, %v366_v7 }
  0xeb   : > { %v372_v13 = vmul.f32 %v370_v10, %v222_v60  ;;  %v373_v14 = vmul.f32 %v371_v11, %v223_v61 }
  0xed   : > { %v376_v17 = vrot.slane %v372_v13, 4  ;;  %v377_v18 = vrot.slane %v373_v14, 4 }
  0xef   : > { %380 = vst [vmem:[#allocation2 + $0x30] sm:$0xf0] %v376_v17 }
  0xf0   : > { %381 = vst [vmem:[#allocation2 + $0x38] sm:$0xf0] %v377_v18 }
  0xf1   : > { %v241_v25 = vpop.permute.xlu0 %240  ;;  %v390_v26 = vpop.permute.xlu1 %389 }
  0xf2   : > { %v243_v27 = vsel %vm242_vm14, %v239_v19, %v241_v25  ;;  %v244_v28 = vsel %vm242_vm14, %v241_v25, %v239_v19  ;;  %v392_v31 = vsel %vm391_vm15, %v388_v9, %v390_v26  ;;  %v393_v32 = vsel %vm391_vm15, %v390_v26, %v388_v9 }
  0xf3   : > { %v247_v33 = vmul.f32 %v245_v21, %v244_v28  ;;  %v248_v34 = vmul.f32 %v246_v22, %v243_v27  ;;  %v396_v35 = vmul.f32 %v394_v23, %v392_v31  ;;  %v397_v36 = vmul.f32 %v395_v24, %v393_v32 }
  0xf5   : > { %249 = vst [vmem:[#allocation2] sm:$0xf] %v247_v33 }
  0xf6   : > { %250 = vst [vmem:[#allocation2 + $0x8] sm:$0xf] %v248_v34  ;;  %v415_v29 = vld [vmem:[#allocation2 + $0x30] sm:$0xff] }
  0xf7   : > { %398 = vst [vmem:[#allocation2 + $0x40] sm:$0xf] %v396_v35  ;;  %v416_v30 = vld [vmem:[#allocation2 + $0x38] sm:$0xff] }
  0xf8   : > { %399 = vst [vmem:[#allocation2 + $0x48] sm:$0xf] %v397_v36 }
  0xf9   : > { %v281_v40 = vpop.permute.xlu1 %280 }
  0xfa   : > { %v283_v41 = vsel %vm282_vm0, %v1132_v38, %v281_v40  ;;  %v284_v42 = vsel %vm282_vm0, %v281_v40, %v1132_v38  ;;  %v414_v38 = vld [vmem:[#allocation2 + $0x28] sm:$0xff] }
  0xfb   : > { %v287_v43 = vmul.f32 %v285_v37, %v284_v42  ;;  %v288_v44 = vmul.f32 %v286_v39, %v283_v41 }
  0xfc   : > { %v409_v49 = vld [vmem:[#allocation2] sm:$0xff] }
  0xfd   : > { %289 = vst [vmem:[#allocation2 + $0x10] sm:$0xf] %v287_v43  ;;  %v410_v52 = vld [vmem:[#allocation2 + $0x8] sm:$0xff] }
  0xfe   : > { %290 = vst [vmem:[#allocation2 + $0x18] sm:$0xf] %v288_v44  ;;  %v417_v45 = vld [vmem:[#allocation2 + $0x40] sm:$0x1f]  ;;  %v541_v44 = vpop.permute.xlu2 %540 }
  0xff   : > { %741 = vmatpush.msk.msra.mxu0 %vm426_vm1, %v417_v45  ;;  %756 = vmatpush.msk.msra.mxu2 %vm426_vm1, %v417_v45  ;;  %v418_v20 = vld [vmem:[#allocation2 + $0x48] sm:$0x1f] }
 0x100   : > { %744 = vmatpush.msk.msra.mxu1 %vm426_vm1, %v418_v20  ;;  %761 = vmatpush.msk.msra.mxu3 %vm426_vm1, %v418_v20 }
 0x101   : > { %445 = vmatpush.msra.mxu0 %v415_v29  ;;  %757 = vmatpush.msra.mxu2 %v415_v29  ;;  %v535_v41 = vpop.permute.xlu1 %534 }
 0x102   : > { %468 = vmatpush.msra.mxu1 %v416_v30  ;;  %762 = vmatpush.msra.mxu3 %v416_v30 }
 0x103   : > { %446 = vmatpush.msra.mxu0 %v413_v46  ;;  %758 = vmatpush.msra.mxu2 %v413_v46 }
 0x104   : > { %469 = vmatpush.msra.mxu1 %v414_v38  ;;  %763 = vmatpush.msra.mxu3 %v414_v38  ;;  %v411_v47 = vld [vmem:[#allocation2 + $0x10] sm:$0xff] }
 0x105   : > { %447 = vmatpush.msra.mxu0 %v411_v47  ;;  %759 = vmatpush.msra.mxu2 %v411_v47  ;;  %v412_v48 = vld [vmem:[#allocation2 + $0x18] sm:$0xff] }
 0x106   : > { %470 = vmatpush.msra.mxu1 %v412_v48  ;;  %764 = vmatpush.msra.mxu3 %v412_v48 }
 0x107   : > { %448 = vmatpush.msra.mxu0 %v409_v49  ;;  %760 = vmatpush.msra.mxu2 %v409_v49 }
 0x108   : > { %471 = vmatpush.msra.mxu1 %v410_v52  ;;  %765 = vmatpush.msra.mxu3 %v410_v52 }
 0x109   : > { %742 = vmatmul.msk.f32.vlgmr.msra.gmra.mxu0 %vm419_vm2, %v407_v50  ;;  %743 = vmatmul.msk.f32.vlgmr.msra.gmra.mxu2 %vm419_vm2, %v408_v51 }
 0x10a   : > { %745 = vmatmul.msk.f32.vlgmr.msra.gmra.mxu1 %vm419_vm2, %v407_v50  ;;  %746 = vmatmul.msk.f32.vlgmr.msra.gmra.mxu3 %vm419_vm2, %v408_v51 }
 0x186   : > { %v450_v53 = vpop.f32.mrf.mxu0 }
 0x187   : > { %v479_v54 = vmul.f32 %v450_v53, %v450_v53  ;;  %v473_v55 = vpop.f32.mrf.mxu1 }
 0x188   : > { %v480_v56 = vmul.f32 %v473_v55, %v473_v55 }
 0x189   : > { %v481_v57 = vrot.slane %v479_v54, 4 }
 0x18a   : > { %v487_v58 = vrot.slane %v480_v56, 4 }
 0x18b   : > { %v482_v59 = vadd.f32 %v481_v57, %v479_v54 }
 0x18c   : > { %v488_v60 = vadd.f32 %v487_v58, %v480_v56  ;;  %v453_v3 = vpop.f32.mrf.mxu2 }
 0x18d   : > { %v483_v61 = vrot.slane %v482_v59, 2  ;;  %v495_v5 = vmul.f32 %v453_v3, %v453_v3  ;;  %v476_v6 = vpop.f32.mrf.mxu3  ;;  %v524_v27 = vperm.slane %v453_v3, 0 }
 0x18e   : > { %v489_v62 = vrot.slane %v488_v60, 2  ;;  %v496_v8 = vmul.f32 %v476_v6, %v476_v6  ;;  %v525_v31 = vperm.slane %v476_v6, 0 }
 0x18f   : > { %v484_v63 = vadd.f32 %v483_v61, %v482_v59  ;;  %v526_v35 = vsub.f32 %v450_v53, %v524_v27 }
 0x190   : > { %v490_v0 = vadd.f32 %v489_v62, %v488_v60  ;;  %v527_v39 = vsub.f32 %v473_v55, %v525_v31 }
 0x191   : > { %v485_v1 = vrot.slane %v484_v63, 1 }
 0x192   : > { %v491_v2 = vrot.slane %v490_v0, 1 }
 0x193   : > { %v486_v4 = vadd.f32 %v485_v1, %v484_v63 }
 0x194   : > { %v492_v7 = vadd.f32 %v491_v2, %v490_v0 }
 0x195   : > { %v493_v9 = vmul.f32 0.125, %v486_v4 }
 0x196   : > { %v494_v10 = vmul.f32 0.125, %v492_v7 }
 0x197   : > { %v497_v11 = vsub.f32 %v493_v9, %v495_v5 }
 0x198   : > { %v498_v12 = vsub.f32 %v494_v10, %v496_v8 }
 0x199   : > { %v499_v13 = vmax.f32 %v497_v11, 0.0 }
 0x19a   : > { %v500_v14 = vmax.f32 %v498_v12, 0.0 }
 0x19b   : > { %v501_v15 = vadd.f32 1e-06, %v499_v13 }
 0x19c   : > { %v502_v16 = vadd.f32 1e-06, %v500_v14 }
 0x19d   : > { %840 = vrsqrt.f32 %v501_v15  ;;  %vm509_vm5 = vweird.f32 %v501_v15 }
 0x19e   : > { %842 = vrsqrt.f32 %v502_v16  ;;  %vm519_vm6 = vweird.f32 %v502_v16 }
 0x1a3   : > { %v841_v17 = vpop.eup %840 }
 0x1a4   : > { %v843_v18 = vpop.eup %842  ;;  %v504_v19 = vmul.f32 %v841_v17, %v501_v15  ;;  %vm510_vm3 = vweird.f32 %v841_v17 }
 0x1a5   : > { %v514_v21 = vmul.f32 %v843_v18, %v502_v16  ;;  %vm520_vm4 = vweird.f32 %v843_v18  ;;  %vm511_vm7 = vmor %vm509_vm5, %vm510_vm3 }
 0x1a6   : > { %v505_v22 = vmul.f32 %v841_v17, %v504_v19  ;;  %vm521_vm8 = vmor %vm519_vm6, %vm520_vm4 }
 0x1a7   : > { %v515_v23 = vmul.f32 %v843_v18, %v514_v21 }
 0x1a8   : > { %v506_v24 = vmul.f32 0.5, %v505_v22 }
 0x1a9   : > { %v516_v25 = vmul.f32 0.5, %v515_v23 }
 0x1aa   : > { %v507_v26 = vsub.f32 1.5, %v506_v24 }
 0x1ab   : > { %v517_v28 = vsub.f32 1.5, %v516_v25 }
 0x1ac   : > { %v508_v32 = vmul.f32 %v841_v17, %v507_v26 }
 0x1ad   : > { %v518_v33 = vmul.f32 %v843_v18, %v517_v28 }
 0x1ae   : > { %v512_v34 = vsel %vm511_vm7, %v841_v17, %v508_v32 }
 0x1af   : > { %v522_v36 = vsel %vm521_vm8, %v843_v18, %v518_v33  ;;  %v528_v37 = vperm.slane %v512_v34, 0 }
 0x1b0   : > { %v529_v40 = vperm.slane %v522_v36, 0 }
 0x1b1   : > { %v530_v42 = vmul.f32 %v528_v37, %v526_v35 }
 0x1b2   : > { %v531_v43 = vmul.f32 %v529_v40, %v527_v39 }
 0x1b3   : > { %v537_v45 = vmul.f32 %v535_v41, %v530_v42 }
 0x1b4   : > { %v538_v20 = vmul.f32 %v535_v41, %v531_v43 }
 0x1b5   : > { %v1171_v29 = vadd.f32 %v541_v44, %v537_v45 }
 0x1b6   : > { %v1173_v30 = vadd.f32 %v541_v44, %v538_v20 }
 0x1b7   : > { %v547_v46 = vmul.f32 0.70710677, %v1171_v29 }
 0x1b8   : > { %v548_v38 = vmul.f32 0.70710677, %v1173_v30 }
 0x1b9   : > { %v1177_v47 = vclamps-f32 %v547_v46, 4.0 }
 0x1ba   : > { %v1179_v48 = vclamps-f32 %v548_v38, 4.0 }
 0x1bb   : > { %v553_v49 = vmul.f32 %v1177_v47, %v1177_v47 }
 0x1bc   : > { %v554_v50 = vmul.f32 %v1179_v48, %v1179_v48 }
 0x1bd   : > { %v555_v51 = vmul.f32 -2.7261424e-10, %v553_v49  ;;  %v579_v52 = vmul.f32 -1.45660715e-05, %v553_v49 }
 0x1be   : > { %v556_v53 = vmul.f32 -2.7261424e-10, %v554_v50  ;;  %v580_v54 = vmul.f32 -1.45660715e-05, %v554_v50 }
 0x1bf   : > { %v557_v55 = vadd.f32 2.7706815e-08, %v555_v51  ;;  %v581_v56 = vadd.f32 -0.00021337405, %v579_v52 }
 0x1c0   : > { %v558_v57 = vadd.f32 2.7706815e-08, %v556_v53  ;;  %v582_v58 = vadd.f32 -0.00021337405, %v580_v54 }
 0x1c1   : > { %v559_v59 = vmul.f32 %v557_v55, %v553_v49  ;;  %v583_v60 = vmul.f32 %v581_v56, %v553_v49  ;;  %v545_v55 = vmul.f32 0.5, %v1171_v29 }
 0x1c2   : > { %v560_v61 = vmul.f32 %v558_v57, %v554_v50  ;;  %v584_v62 = vmul.f32 %v582_v58, %v554_v50 }
 0x1c3   : > { %v561_v63 = vadd.f32 -2.101024e-06, %v559_v59  ;;  %v585_v0 = vadd.f32 -0.001682827, %v583_v60 }
 0x1c4   : > { %v562_v1 = vadd.f32 -2.101024e-06, %v560_v61  ;;  %v586_v2 = vadd.f32 -0.001682827, %v584_v62 }
 0x1c5   : > { %v563_v3 = vmul.f32 %v561_v63, %v553_v49  ;;  %v587_v4 = vmul.f32 %v585_v0, %v553_v49 }
 0x1c6   : > { %v564_v5 = vmul.f32 %v562_v1, %v554_v50  ;;  %v588_v6 = vmul.f32 %v586_v2, %v554_v50 }
 0x1c7   : > { %v565_v7 = vadd.f32 -5.6925062e-05, %v563_v3  ;;  %v589_v8 = vadd.f32 -0.0073733293, %v587_v4 }
 0x1c8   : > { %v566_v9 = vadd.f32 -5.6925062e-05, %v564_v5  ;;  %v590_v10 = vadd.f32 -0.0073733293, %v588_v6 }
 0x1c9   : > { %v567_v11 = vmul.f32 %v565_v7, %v553_v49  ;;  %v591_v12 = vmul.f32 %v589_v8, %v553_v49 }
 0x1ca   : > { %v568_v13 = vmul.f32 %v566_v9, %v554_v50  ;;  %v592_v14 = vmul.f32 %v590_v10, %v554_v50 }
 0x1cb   : > { %v569_v15 = vadd.f32 -0.00073499064, %v567_v11  ;;  %v593_v16 = vadd.f32 -0.014264739, %v591_v12 }
 0x1cc   : > { %v570_v17 = vadd.f32 -0.00073499064, %v568_v13  ;;  %v594_v18 = vadd.f32 -0.014264739, %v592_v14 }
 0x1cd   : > { %v571_v19 = vmul.f32 %v569_v15, %v553_v49  ;;  %844 = vrcp.f32 %v593_v16  ;;  %v606_v33 = vand.u32 2147483647, %v593_v16  ;;  %v608_v34 = vand.u32 2147483648, %v593_v16 }
 0x1ce   : > { %v572_v21 = vmul.f32 %v570_v17, %v554_v50  ;;  %846 = vrcp.f32 %v594_v18  ;;  %v623_v39 = vand.u32 2147483648, %v594_v18  ;;  %v621_v42 = vand.u32 2147483647, %v594_v18 }
 0x1cf   : > { %v573_v22 = vadd.f32 -0.0029546, %v571_v19  ;;  %vm602_vm11 = vweird.f32 %v593_v16  ;;  %v609_v44 = vor.u32 1.1754944e-38, %v608_v34  ;;  %vm617_vm13 = vweird.f32 %v594_v18 }
 0x1d0   : > { %v574_v23 = vadd.f32 -0.0029546, %v572_v21  ;;  %vm607_vm14 = vcmp.eq.f32.partialorder %v606_v33, 8.507059e+37  ;;  %v624_v38 = vor.u32 1.1754944e-38, %v623_v39  ;;  %vm622_vm0 = vcmp.eq.f32.partialorder %v621_v42, 8.507059e+37 }
 0x1d1   : > { %v575_v26 = vmul.f32 %v573_v22, %v553_v49 }
 0x1d2   : > { %v576_v28 = vmul.f32 %v574_v23, %v554_v50 }
 0x1d3   : > { %v845_v24 = vpop.eup %844  ;;  %v577_v36 = vadd.f32 -0.016096033, %v575_v26 }
 0x1d4   : > { %v847_v25 = vpop.eup %846  ;;  %v598_v27 = vmul.f32 %v845_v24, %v593_v16  ;;  %vm603_vm9 = vweird.f32 %v845_v24  ;;  %v578_v40 = vadd.f32 -0.016096033, %v576_v28 }
 0x1d5   : > { %v613_v31 = vmul.f32 %v847_v25, %v594_v18  ;;  %vm618_vm10 = vweird.f32 %v847_v25  ;;  %vm604_vm12 = vmor %vm602_vm11, %vm603_vm9  ;;  %v595_v20 = vmul.f32 %v1177_v47, %v577_v36 }
 0x1d6   : > { %v599_v32 = vsub.f32 1.0, %v598_v27  ;;  %vm619_vm15 = vmor %vm617_vm13, %vm618_vm10  ;;  %v596_v49 = vmul.f32 %v1179_v48, %v578_v40  ;;  %v546_v48 = vmul.f32 0.5, %v1173_v30 }
 0x1d7   : > { %v614_v35 = vsub.f32 1.0, %v613_v31 }
 0x1d8   : > { %v600_v37 = vmul.f32 %v845_v24, %v599_v32 }
 0x1d9   : > { %v615_v41 = vmul.f32 %v847_v25, %v614_v35 }
 0x1da   : > { %v601_v43 = vadd.f32 %v845_v24, %v600_v37 }
 0x1db   : > { %v616_v45 = vadd.f32 %v847_v25, %v615_v41 }
 0x1dc   : > { %v605_v46 = vsel %vm604_vm12, %v845_v24, %v601_v43 }
 0x1dd   : > { %v610_v50 = vsel %vm607_vm14, %v609_v44, %v605_v46  ;;  %v620_v51 = vsel %vm619_vm15, %v847_v25, %v616_v45 }
 0x1de   : > { %v611_v52 = vmul.f32 %v610_v50, %v595_v20  ;;  %v625_v53 = vsel %vm622_vm0, %v624_v38, %v620_v51 }
 0x1df   : > { %v626_v54 = vmul.f32 %v625_v53, %v596_v49 }
 0x1e0   : > { %v627_v47 = vadd.f32 1.0, %v611_v52 }
 0x1e1   : > { %v628_v56 = vadd.f32 1.0, %v626_v54 }
 0x1e2   : > { %v629_v57 = vmul.f32 %v627_v47, %v545_v55 }
 0x1e3   : > { %v630_v58 = vmul.f32 %v628_v56, %v546_v48 }
 0x1e4   : > { %631 = vst [vmem:[%s205_s19] sm:$0xff] %v629_v57 }
 0x1e5   : > { %632 = vst [vmem:[%s205_s19 + $0x8] sm:$0xff] %v630_v58 }
 0x1e6   : > { %935 = shalt.err (!%p932_p9)
}
 0x1e7   : > { %772 = dma.vmem_to_hbm [thread:$0]  (%p1075_p13), %s648_s10, 256, %s650_s11, %s634_s20  }
 0x1e8 PF: > { %s661_s5 = sand.u32 1, %s966_s12   ;;  %p1232_p10 = scmp.ge.s32.totalorder %s978_s15, 2 }
 0x1e9   : > { %s662_s24 = scalar_lea.sflag [#allocation5], %s661_s5 }
 0x1ea   : > { %p783_p11 = pnand %p1232_p10, %p1080_p4 }
 0x1ec   : > { %p784_p0 = pneg %p783_p11 }
 0x1ee   : > { %961 = dma.done.wait (%p784_p0), %s662_s24, 256  }
 0x1ef   : > { %963 = vsyncadd (%p784_p0), %s662_s24, 4294967040  ;;  %p17_p2 = scmp.ge.s32.totalorder %s1055_s26, 4   ;;  %s1233_s12 = smov %s970_s13 }
 0x1f0   : > { %s1234_s13 = smov %s974_s14  ;;  %s1235_s14 = smov %s1067_s29 }
 0x1f1   : > { %s1236_s15 = smov %s1055_s26  ;;  %19 = sbr.rel (!%p17_p2) target bundleno = 6 (0x6), region = 82 }
 0x1f6   :  { %668 = vsyncpa [#allocation4], 1 }
 0x1f7   :  { %670 = vsyncpa [#allocation4 + $0x1], 1 }
 0x1f8   :  { %671 = vsyncpa [#allocation7], 1 }
 0x1f9   :  { %672 = vsyncpa [#allocation5], 1 }
 0x1fa   :  { %674 = vsyncpa [#allocation5 + $0x1], 1 }

</bundles_post_ra>
